<compile_context>
chip_gen: v6e
topology: v6e:2x2x1
jax: 0.10.0
libtpu: 0.0.40
codegen_flags: <defaults>
</compile_context>

<pallas_src>
import functools
from typing import List, Mapping

import jax
import jax.numpy as jnp
import numpy as np
from jax.experimental import pallas as pl
from jax.experimental.pallas import tpu as pltpu

_LANE = 128          # lane width
_SUBLANE_1B = 32     # 1-byte-dtype rows per sublane group -> unmasked stores
_MAX_C_BLK = 1024    # class-axis tile cap (lane dense, multiple of 128)
_MAX_B_BLK = 256     # batch-axis tile cap (bounds int32 temporaries in VMEM)
_MIN_K = 4           # bucket floor for the names-per-sample axis
_UNROLL_K_MAX = 16   # fully unroll the K loop up to this many names


def _round_up(x: int, m: int) -> int:
    return (x + m - 1) // m * m


def _next_pow2(x: int) -> int:
    return 1 if x <= 1 else 1 << (x - 1).bit_length()


def _multihot_kernel(hit_ref, idx_ref, out_ref):
    """hit_ref: (n_b_tiles, n_c_tiles) int32 in SMEM (scalar-prefetched).
    idx_ref: (b_blk, K) int32 in VMEM, padded with -1.
    out_ref: (b_blk, c_blk) in the requested 1-byte (or wider) dtype."""
    b_blk, K = idx_ref.shape
    c_blk = out_ref.shape[1]
    i = pl.program_id(0)          # batch tile
    j = pl.program_id(1)          # class tile
    has_hit = hit_ref[i, j] != 0  # host-precomputed: any name lands in this tile?

    @pl.when(jnp.logical_not(has_hit))
    def _():
        # Empty class tile: skip all compare/OR work, just store zeros.
        out_ref[...] = jnp.zeros_like(out_ref)

    @pl.when(has_hit)
    def _():
        c_off = j * c_blk
        # Tile-local indices: one O(b_blk*K) subtract instead of an
        # O(b_blk*c_blk) add on the iota. -1 padding stays negative -> no match.
        idx_local = idx_ref[...] - c_off
        # Grid-invariant class iota (hoisted out of the K loop; built once per
        # non-empty tile).
        classes = jax.lax.broadcasted_iota(jnp.int32, (b_blk, c_blk), 1)

        hot = jnp.zeros((b_blk, c_blk), dtype=jnp.bool_)
        if K <= _UNROLL_K_MAX:
            # Small, static K: full unroll -> one compare + one OR per name.
            for k in range(K):
                hot = jnp.logical_or(hot, idx_local[:, k:k + 1] == classes)
        else:
            # Large K: bound live ranges with a rolled loop (light unroll).
            def body(k, h):
                col = idx_ref[:, pl.ds(k, 1)] - c_off
                return jnp.logical_or(h, col == classes)
            hot = jax.lax.fori_loop(0, K, body, hot, unroll=4)

        out_ref[...] = hot.astype(out_ref.dtype)


@functools.partial(
    jax.jit,
    static_argnames=("batch", "num_classes", "b_blk", "c_blk", "dtype"))
def _multihot_device(hit_map, indices_padded, *, batch, num_classes, b_blk,
                     c_blk, dtype):
    """hit_map: (n_b, n_c) int32. indices_padded: (Bp, K) int32 (-1 padded).
    Returns (batch, num_classes) array of `dtype`."""
    Bp, K = indices_padded.shape
    c_pad = _round_up(num_classes, c_blk)
    grid = (Bp // b_blk, c_pad // c_blk)

    out = pl.pallas_call(
        _multihot_kernel,
        out_shape=jax.ShapeDtypeStruct((Bp, c_pad), dtype),
        grid_spec=pltpu.PrefetchScalarGridSpec(
            num_scalar_prefetch=1,
            grid=grid,
            # idx block only depends on the batch tile -> with the class axis
            # innermost it stays resident (no re-DMA across class tiles).
            in_specs=[pl.BlockSpec((b_blk, K), lambda i, j, hit: (i, 0))],
            out_specs=pl.BlockSpec((b_blk, c_blk), lambda i, j, hit: (i, j)),
        ),
        compiler_params=pltpu.CompilerParams(
            dimension_semantics=("parallel", "parallel")),
    )(hit_map, indices_padded)

    # Only pay for the slice when padding actually exists.
    if batch != Bp or num_classes != c_pad:
        out = out[:batch, :num_classes]
    return out


def multinames_to_multihot(names: List[List[str]],
                           idx_to_name: Mapping[int, str],
                           dtype=jnp.bool_) -> jnp.ndarray:
    """JAX/Pallas equivalent of torchwrench.multinames_to_multihot."""
    # TODO(synk): string -> index lookup is pure host Python (dict over Python
    # strings); it has no device equivalent and stays on the host.
    name_to_idx = {v: k for k, v in idx_to_name.items()}
    num_classes = len(idx_to_name)
    B = len(names)

    # Bucketed static shapes so repeated calls don't retrace/recompile.
    K_raw = max(max((len(ns) for ns in names), default=0), 1)
    K = _next_pow2(max(K_raw, _MIN_K))

    Bp = _round_up(max(B, 1), _SUBLANE_1B)
    Bp = _next_pow2(Bp) if Bp <= _MAX_B_BLK else _round_up(Bp, _MAX_B_BLK)
    b_blk = min(Bp, _MAX_B_BLK)

    # Lane-dense class tile, multiple of 128, capped to keep int32
    # intermediates well inside VMEM (v7x 64 MiB).
    c_blk = min(_MAX_C_BLK, _round_up(num_classes, _LANE))
    c_pad = _round_up(num_classes, c_blk)
    n_b, n_c = Bp // b_blk, c_pad // c_blk

    idx_np = np.full((Bp, K), -1, dtype=np.int32)   # -1 never matches a class id
    hit_np = np.zeros((n_b, n_c), dtype=np.int32)   # per-(batch,class)-tile hits
    for b, ns in enumerate(names):
        if not ns:
            continue
        ids = [int(name_to_idx[n]) for n in ns]
        idx_np[b, :len(ids)] = ids
        bt = b // b_blk
        for cid in ids:
            hit_np[bt, cid // c_blk] = 1

    indices = jnp.asarray(idx_np)
    hit_map = jnp.asarray(hit_np)

    return _multihot_device(hit_map, indices, batch=B, num_classes=num_classes,
                            b_blk=b_blk, c_blk=c_blk, dtype=dtype)


class MultinamesToMultihot:
    """Stateless module mirroring the PyTorch MultinamesToMultihot."""

    def __init__(self, idx_to_name: Mapping[int, str], dtype=jnp.bool_):
        # `device=` from the PyTorch module is dropped: JAX handles placement.
        self.idx_to_name = idx_to_name
        self.dtype = dtype

    def __call__(self, names: List[List[str]]) -> jnp.ndarray:
        return multinames_to_multihot(names, self.idx_to_name, dtype=self.dtype)


if __name__ == "__main__":
    # ---- Test 1: default bool dtype, num_classes not a multiple of 128 ----
    num_classes = 300
    idx_to_name = {i: f"class_{i}" for i in range(num_classes)}

    B, K = 4, 8
    key = jax.random.PRNGKey(0)
    rand_idx = jax.random.randint(key, (B, K), 0, num_classes)
    rand_idx_np = np.asarray(rand_idx)

    lens = [3, 8, 1, 5]
    names = [
        [idx_to_name[int(rand_idx_np[b, k])] for k in range(lens[b])]
        for b in range(B)
    ]

    module = MultinamesToMultihot(idx_to_name, dtype=jnp.bool_)
    out = module(names)
    out = jax.block_until_ready(out)

    ref = np.zeros((B, num_classes), dtype=bool)
    for b, ns in enumerate(names):
        for n in ns:
            ref[b, int(n.split("_")[1])] = True
    assert out.shape == (B, num_classes)
    assert out.dtype == jnp.bool_
    np.testing.assert_array_equal(np.asarray(out), ref)

    # ---- Test 2: multiple class tiles (exercises the empty-tile early-out)
    # ---- and a non-bool 1-byte dtype written directly by the kernel.
    num_classes2 = 1500
    idx_to_name2 = {i: f"c{i}" for i in range(num_classes2)}
    id_lists2 = [[5, 17, 900], [1023, 1023], [0]]  # all in class tile 0 -> tile 1 empty
    names2 = [[idx_to_name2[i] for i in ids] for ids in id_lists2]

    module2 = MultinamesToMultihot(idx_to_name2, dtype=jnp.int8)
    out2 = jax.block_until_ready(module2(names2))

    ref2 = np.zeros((len(names2), num_classes2), dtype=np.int8)
    for b, ids in enumerate(id_lists2):
        for i in ids:
            ref2[b, i] = 1
    assert out2.shape == (len(names2), num_classes2)
    assert out2.dtype == jnp.int8
    np.testing.assert_array_equal(np.asarray(out2), ref2)

    print("KERNEL_OK")
</pallas_src>

<mosaic_0001>
module attributes {stable_mosaic.version = 11 : i64} {
  func.func @_multihot_kernel(%arg0: i32, %arg1: i32, %arg2: memref<1x1xi32, #tpu.memory_space<smem>>, %arg3: memref<32x8xi32, #tpu.memory_space<vmem>>, %arg4: memref<32x384xi32, #tpu.memory_space<vmem>>) attributes {dimension_semantics = [#tpu.dimension_semantics<parallel>, #tpu.dimension_semantics<parallel>], iteration_bounds = array<i64: 1, 1>, scalar_prefetch = 1 : i64, scratch_operands = 0 : i64, tpu.core_type = #tpu.core_type<tc>, window_params = [{transform_indices = @transform_0, window_bounds = array<i64: 32, 8>}, {transform_indices = @transform_1, window_bounds = array<i64: 32, 384>}]} {
    %0 = arith.index_cast %arg0 : i32 to index
    %1 = arith.index_cast %arg1 : i32 to index
    %2 = memref.load %arg2[%0, %1] : memref<1x1xi32, #tpu.memory_space<smem>>
    %c0_i32 = arith.constant 0 : i32
    %3 = arith.cmpi ne, %2, %c0_i32 : i32
    %true = arith.constant true
    %4 = arith.xori %3, %true : i1
    %5 = arith.extui %4 : i1 to i32
    %c0_i32_0 = arith.constant 0 : i32
    %6 = arith.cmpi ne, %5, %c0_i32_0 : i32
    scf.if %6 {
      %false = arith.constant false
      %9 = vector.broadcast %false : i1 to vector<32x384xi1>
      %c0 = arith.constant 0 : index
      %c0_2 = arith.constant 0 : index
      %10 = vector.load %arg4[%c0, %c0_2] : memref<32x384xi32, #tpu.memory_space<vmem>>, vector<32x384xi32>
      %11 = arith.extui %9 : vector<32x384xi1> to vector<32x384xi32>
      %cst = arith.constant dense<0> : vector<32x384xi32>
      %12 = arith.cmpi ne, %10, %cst : vector<32x384xi32>
      tpu.vector_store %arg4[%c0, %c0_2], %11 {strides = array<i32>} : memref<32x384xi32, #tpu.memory_space<vmem>>, vector<32x384xi32>,
    } else {
    }
    %7 = arith.extui %3 : i1 to i32
    %c0_i32_1 = arith.constant 0 : i32
    %8 = arith.cmpi ne, %7, %c0_i32_1 : i32
    scf.if %8 {
      %c384_i32 = arith.constant 384 : i32
      %9 = arith.muli %arg1, %c384_i32 : i32
      %c0 = arith.constant 0 : index
      %c0_2 = arith.constant 0 : index
      %10 = vector.load %arg3[%c0, %c0_2] : memref<32x8xi32, #tpu.memory_space<vmem>>, vector<32x8xi32>
      %11 = vector.broadcast %9 : i32 to vector<32x8xi32>
      %12 = arith.subi %10, %11 : vector<32x8xi32>
      %13 = tpu.iota {dimensions = array<i32: 1>} : vector<32x384xi32>
      %false = arith.constant false
      %14 = vector.broadcast %false : i1 to vector<32x384xi1>
      %15 = vector.extract_strided_slice %12 {offsets = [0, 0], sizes = [32, 1], strides = [1, 1]} : vector<32x8xi32> to vector<32x1xi32>
      %16 = vector.broadcast %15 : vector<32x1xi32> to vector<32x384xi32>
      %17 = arith.cmpi eq, %16, %13 : vector<32x384xi32>
      %18 = arith.ori %14, %17 : vector<32x384xi1>
      %19 = vector.extract_strided_slice %12 {offsets = [0, 1], sizes = [32, 1], strides = [1, 1]} : vector<32x8xi32> to vector<32x1xi32>
      %20 = vector.broadcast %19 : vector<32x1xi32> to vector<32x384xi32>
      %21 = arith.cmpi eq, %20, %13 : vector<32x384xi32>
      %22 = arith.ori %18, %21 : vector<32x384xi1>
      %23 = vector.extract_strided_slice %12 {offsets = [0, 2], sizes = [32, 1], strides = [1, 1]} : vector<32x8xi32> to vector<32x1xi32>
      %24 = vector.broadcast %23 : vector<32x1xi32> to vector<32x384xi32>
      %25 = arith.cmpi eq, %24, %13 : vector<32x384xi32>
      %26 = arith.ori %22, %25 : vector<32x384xi1>
      %27 = vector.extract_strided_slice %12 {offsets = [0, 3], sizes = [32, 1], strides = [1, 1]} : vector<32x8xi32> to vector<32x1xi32>
      %28 = vector.broadcast %27 : vector<32x1xi32> to vector<32x384xi32>
      %29 = arith.cmpi eq, %28, %13 : vector<32x384xi32>
      %30 = arith.ori %26, %29 : vector<32x384xi1>
      %31 = vector.extract_strided_slice %12 {offsets = [0, 4], sizes = [32, 1], strides = [1, 1]} : vector<32x8xi32> to vector<32x1xi32>
      %32 = vector.broadcast %31 : vector<32x1xi32> to vector<32x384xi32>
      %33 = arith.cmpi eq, %32, %13 : vector<32x384xi32>
      %34 = arith.ori %30, %33 : vector<32x384xi1>
      %35 = vector.extract_strided_slice %12 {offsets = [0, 5], sizes = [32, 1], strides = [1, 1]} : vector<32x8xi32> to vector<32x1xi32>
      %36 = vector.broadcast %35 : vector<32x1xi32> to vector<32x384xi32>
      %37 = arith.cmpi eq, %36, %13 : vector<32x384xi32>
      %38 = arith.ori %34, %37 : vector<32x384xi1>
      %39 = vector.extract_strided_slice %12 {offsets = [0, 6], sizes = [32, 1], strides = [1, 1]} : vector<32x8xi32> to vector<32x1xi32>
      %40 = vector.broadcast %39 : vector<32x1xi32> to vector<32x384xi32>
      %41 = arith.cmpi eq, %40, %13 : vector<32x384xi32>
      %42 = arith.ori %38, %41 : vector<32x384xi1>
      %43 = vector.extract_strided_slice %12 {offsets = [0, 7], sizes = [32, 1], strides = [1, 1]} : vector<32x8xi32> to vector<32x1xi32>
      %44 = vector.broadcast %43 : vector<32x1xi32> to vector<32x384xi32>
      %45 = arith.cmpi eq, %44, %13 : vector<32x384xi32>
      %46 = arith.ori %42, %45 : vector<32x384xi1>
      %c0_3 = arith.constant 0 : index
      %c0_4 = arith.constant 0 : index
      %47 = vector.load %arg4[%c0_3, %c0_4] : memref<32x384xi32, #tpu.memory_space<vmem>>, vector<32x384xi32>
      %48 = arith.extui %46 : vector<32x384xi1> to vector<32x384xi32>
      %cst = arith.constant dense<0> : vector<32x384xi32>
      %49 = arith.cmpi ne, %47, %cst : vector<32x384xi32>
      tpu.vector_store %arg4[%c0_3, %c0_4], %48 {strides = array<i32>} : memref<32x384xi32, #tpu.memory_space<vmem>>, vector<32x384xi32>,
    } else {
    }
    return
  }
  func.func @transform_0(%arg0: i32, %arg1: i32, %arg2: memref<1x1xi32, #tpu.memory_space<smem>>) -> (i32, i32) {
    %c0_i32 = arith.constant 0 : i32
    %c0_i32_0 = arith.constant 0 : i32
    return %arg0, %c0_i32 : i32, i32
  }
  func.func @transform_1(%arg0: i32, %arg1: i32, %arg2: memref<1x1xi32, #tpu.memory_space<smem>>) -> (i32, i32) {
    %c0_i32 = arith.constant 0 : i32
    return %arg0, %arg1 : i32, i32
  }
}

</mosaic_0001>

<bundles_post_ra>
// kernel: _multihot_device.1
= control target key start
LH: loop header
LB: loop body
LE: loop exit
PB: predicated region body
PF: predicated region fallthrough
CT: control target
= control target key end

     0   :  { %s1000_s0 = inlined_call_operand.<no memory space> [shape: s32[1,1], index: 0, kind: input, shape index: {}]   ;;  %s1001_s1 = inlined_call_operand.vmem [shape: s32[32,8], index: 1, kind: input, shape index: {}]   ;;  %s1002_s2 = inlined_call_operand.vmem [shape: s32[32,384], index: 2, kind: output, shape index: {}]  }
   0x1   :  { %p352_p0 = scmp.ne.s32.totalorder %s1000_s0, 0 }
   0x3   :  { %18 = sbr.rel (%p352_p0) target bundleno = 15 (0xf), region = 9 }
   0x8   :  { %v379_v0 = vmov 0  }
   0x9   :  { %19 = vst [vmem:[%s1002_s2] sm:$0xff] %v379_v0  ;;  %20 = vst [vmem:[%s1002_s2 + $0x8] sm:$0xff] %v379_v0 }
   0xa   :  { %21 = vst [vmem:[%s1002_s2 + $0x10] sm:$0xff] %v379_v0  ;;  %22 = vst [vmem:[%s1002_s2 + $0x18] sm:$0xff] %v379_v0 }
   0xb   :  { %23 = vst [vmem:[%s1002_s2 + $0x20] sm:$0xff] %v379_v0  ;;  %24 = vst [vmem:[%s1002_s2 + $0x28] sm:$0xff] %v379_v0 }
   0xc   :  { %25 = vst [vmem:[%s1002_s2 + $0x30] sm:$0xff] %v379_v0  ;;  %26 = vst [vmem:[%s1002_s2 + $0x38] sm:$0xff] %v379_v0 }
   0xd   :  { %27 = vst [vmem:[%s1002_s2 + $0x40] sm:$0xff] %v379_v0  ;;  %28 = vst [vmem:[%s1002_s2 + $0x48] sm:$0xff] %v379_v0 }
   0xe   :  { %29 = vst [vmem:[%s1002_s2 + $0x50] sm:$0xff] %v379_v0  ;;  %30 = vst [vmem:[%s1002_s2 + $0x58] sm:$0xff] %v379_v0 }
   0xf PF:  { %p353_p1 = scmp.eq.s32.totalorder %s1000_s0, 0 }
  0x11   :  { %33 = sbr.rel (%p353_p1) target bundleno = 244 (0xf4), region = 13 }
  0x16   :  { %v37_v1 = vld [vmem:[%s1001_s1 + $0x10] sm:$0xff]  ;;  %v35_v2 = vld [vmem:[%s1001_s1] sm:$0xff]  ;;  %v380_v3 = vmov 0   ;;  %v38_v4 = vld [vmem:[%s1001_s1 + $0x18] sm:$0xff]  ;;  %v381_v6 = vmov 1   ;;  %v382_v7 = vmov 2   ;;  %v44_v23 = vlaneseq }
  0x17   :  { %364 = vset.pattern.permute.xlu1 %v380_v3  ;;  %363 = vset.pattern.permute.xlu0 %v380_v3  ;;  %v36_v5 = vld [vmem:[%s1001_s1 + $0x8] sm:$0xff]  ;;  %v383_v8 = vmov 3   ;;  %v384_v9 = vmov 4   ;;  %v385_v10 = vmov 5   ;;  %v386_v11 = vmov 6  }
  0x18   :  { %55 = vperm.xlu1 %364, %v37_v1   ;;  %49 = vperm.xlu0 %363, %v35_v2   ;;  %v387_v12 = vmov 7   ;;  %v467_v26 = vand.u32 127, %v44_v23  ;;  %v1003_v32 = vmov 0  ;;  %v1007_v35 = vmov 0 }
  0x19   :  { %v1011_v37 = vmov 0  ;;  %v1015_v39 = vmov 0  ;;  %v1017_v41 = vmov 0  ;;  %v1019_v42 = vmov 0 }
  0x1a   :  { %v472_v29 = vadd.s32 128, %v467_v26  ;;  %v475_v30 = vadd.s32 256, %v467_v26  ;;  %v1025_v46 = vmov 0  ;;  %v1029_v49 = vmov 0 }
  0x1b   :  { %v1034_v51 = vmov 0  ;;  %v1037_v52 = vmov 0  ;;  %v1040_v53 = vmov 0  ;;  %v1043_v54 = vmov 0 }
  0x1c   :  { %58 = vperm.xlu1 %364, %v38_v4   ;;  %52 = vperm.xlu0 %363, %v36_v5   ;;  %v1045_v55 = vmov 0  ;;  %v1048_v58 = vmov 0  ;;  %v1050_v59 = vmov 0  ;;  %v1053_v60 = vmov 0 }
  0x1d   :  { %v1055_v61 = vmov 0  ;;  %v1059_v0 = vmov 0  ;;  %v1110_v23 = vmov 0  ;;  %v1129_v33 = vmov 0 }
  0x20   :  { %366 = vset.pattern.permute.xlu1 %v381_v6  ;;  %365 = vset.pattern.permute.xlu0 %v381_v6 }
  0x21   :  { %76 = vperm.xlu1 %366, %v36_v5   ;;  %73 = vperm.xlu0 %365, %v35_v2  }
  0x25   :  { %79 = vperm.xlu1 %366, %v37_v1   ;;  %82 = vperm.xlu0 %365, %v38_v4  }
  0x29   :  { %367 = vset.pattern.permute.xlu1 %v382_v7  ;;  %368 = vset.pattern.permute.xlu0 %v382_v7  ;;  %v1073_v7 = vmov 0 }
  0x2a   :  { %109 = vperm.xlu1 %367, %v35_v2   ;;  %112 = vperm.xlu0 %368, %v36_v5  }
  0x2e   :  { %115 = vperm.xlu1 %367, %v37_v1   ;;  %369 = vset.pattern.permute.xlu0 %v383_v8 }
  0x2f   :  { %145 = vperm.xlu0 %369, %v35_v2  }
  0x32   :  { %118 = vperm.xlu1 %367, %v38_v4  }
  0x33   :  { %154 = vperm.xlu0 %369, %v38_v4  }
  0x36   :  { %370 = vset.pattern.permute.xlu1 %v383_v8  ;;  %v1076_v8 = vmov 0 }
  0x37   :  { %148 = vperm.xlu1 %370, %v36_v5   ;;  %372 = vset.pattern.permute.xlu0 %v384_v9 }
  0x38   :  { %184 = vperm.xlu0 %372, %v36_v5  }
  0x3b   :  { %151 = vperm.xlu1 %370, %v37_v1  }
  0x3c   :  { %373 = vset.pattern.permute.xlu0 %v385_v10 }
  0x3d   :  { %217 = vperm.xlu0 %373, %v35_v2  }
  0x3f   :  { %371 = vset.pattern.permute.xlu1 %v384_v9 }
  0x40   :  { %181 = vperm.xlu1 %371, %v35_v2  }
  0x41   :  { %226 = vperm.xlu0 %373, %v38_v4  }
  0x44   :  { %187 = vperm.xlu1 %371, %v37_v1  }
  0x45   :  { %376 = vset.pattern.permute.xlu0 %v386_v11 }
  0x46   :  { %256 = vperm.xlu0 %376, %v36_v5  }
  0x48   :  { %190 = vperm.xlu1 %371, %v38_v4  }
  0x4a   :  { %377 = vset.pattern.permute.xlu0 %v387_v12 }
  0x4b   :  { %289 = vperm.xlu0 %377, %v35_v2  }
  0x4c   :  { %374 = vset.pattern.permute.xlu1 %v385_v10  ;;  %v1080_v10 = vmov 0 }
  0x4d   :  { %220 = vperm.xlu1 %374, %v36_v5  }
  0x4f   :  { %298 = vperm.xlu0 %377, %v38_v4  }
  0x51   :  { %223 = vperm.xlu1 %374, %v37_v1  }
  0x55   :  { %375 = vset.pattern.permute.xlu1 %v386_v11  ;;  %v1083_v11 = vmov 0 }
  0x56   :  { %253 = vperm.xlu1 %375, %v35_v2   ;;  %v1064_v2 = vmov 0 }
  0x5a   :  { %259 = vperm.xlu1 %375, %v37_v1  }
  0x5e   :  { %262 = vperm.xlu1 %375, %v38_v4   ;;  %v1067_v4 = vmov 0 }
  0x62   :  { %378 = vset.pattern.permute.xlu1 %v387_v12  ;;  %v1086_v12 = vmov 0 }
  0x63   :  { %292 = vperm.xlu1 %378, %v36_v5   ;;  %v1069_v5 = vmov 0 }
  0x67   :  { %295 = vperm.xlu1 %378, %v37_v1   ;;  %v1062_v1 = vmov 0 }
  0x93   :  { %v56_v13 = vpop.permute.xlu1 %55  ;;  %v50_v16 = vpop.permute.xlu0 %49 }
  0x94   :  { %vm60_vm0 = vcmp.eq.s32.totalorder %v50_v16, %v467_v26  ;;  %vm61_vm4 = vcmp.eq.s32.totalorder %v50_v16, %v472_v29  ;;  %vm62_vm8 = vcmp.eq.s32.totalorder %v50_v16, %v475_v30  ;;  %v1096_v16 = vmov 0 }
  0x97   :  { %v459_v14 = vpop.permute.xlu1 %58  ;;  %v53_v18 = vpop.permute.xlu0 %52 }
  0x98   :  { %vm63_vm1 = vcmp.eq.s32.totalorder %v53_v18, %v467_v26  ;;  %vm64_vm5 = vcmp.eq.s32.totalorder %v53_v18, %v472_v29  ;;  %vm65_vm9 = vcmp.eq.s32.totalorder %v53_v18, %v475_v30 }
  0x9c   :  { %v77_v15 = vpop.permute.xlu1 %76  ;;  %v74_v21 = vpop.permute.xlu0 %73 }
  0x9d   :  { %vm87_vm2 = vcmp.eq.s32.totalorder %v77_v15, %v467_v26  ;;  %vm84_vm3 = vcmp.eq.s32.totalorder %v74_v21, %v467_v26  ;;  %vm88_vm6 = vcmp.eq.s32.totalorder %v77_v15, %v472_v29  ;;  %vm85_vm7 = vcmp.eq.s32.totalorder %v74_v21, %v472_v29 }
  0x9e   :  { %vm89_vm10 = vcmp.eq.s32.totalorder %v77_v15, %v475_v30  ;;  %vm86_vm11 = vcmp.eq.s32.totalorder %v74_v21, %v475_v30  ;;  %vm491_vm12 = vmor %vm63_vm1, %vm87_vm2  ;;  %v1094_v15 = vmov 0  ;;  %v1107_v21 = vmov 0 }
  0x9f   :  { %v1004_v32 = vsel %vm491_vm12, 4294967295, %v1003_v32  ;;  %vm495_vm13 = vmor %vm60_vm0, %vm84_vm3  ;;  %vm66_vm12 = vcmp.eq.s32.totalorder %v56_v13, %v467_v26 }
  0xa0   :  { %v80_v17 = vpop.permute.xlu1 %79  ;;  %v83_v24 = vpop.permute.xlu0 %82  ;;  %vm500_vm15 = vmor %vm64_vm5, %vm88_vm6  ;;  %vm67_vm6 = vcmp.eq.s32.totalorder %v56_v13, %v472_v29 }
  0xa1   :  { %vm90_vm14 = vcmp.eq.s32.totalorder %v80_v17, %v467_v26  ;;  %v1008_v35 = vsel %vm500_vm15, 4294967295, %v1007_v35  ;;  %vm504_vm1 = vmor %vm61_vm4, %vm85_vm7  ;;  %vm91_vm2 = vcmp.eq.s32.totalorder %v80_v17, %v472_v29  ;;  %vm92_vm5 = vcmp.eq.s32.totalorder %v80_v17, %v475_v30 }
  0xa2   :  { %vm510_vm0 = vmor %vm65_vm9, %vm89_vm10  ;;  %vm93_vm7 = vcmp.eq.s32.totalorder %v83_v24, %v467_v26  ;;  %vm68_vm9 = vcmp.eq.s32.totalorder %v56_v13, %v475_v30  ;;  %vm94_vm10 = vcmp.eq.s32.totalorder %v83_v24, %v472_v29  ;;  %v1089_v13 = vmov 0 }
  0xa3   :  { %v1012_v37 = vsel %vm510_vm0, 4294967295, %v1011_v37  ;;  %vm514_vm3 = vmor %vm62_vm8, %vm86_vm11 }
  0xa4   :  { %vm520_vm4 = vmor %vm66_vm12, %vm90_vm14  ;;  %vm69_vm12 = vcmp.eq.s32.totalorder %v459_v14, %v467_v26 }
  0xa5   :  { %v110_v19 = vpop.permute.xlu1 %109  ;;  %v113_v27 = vpop.permute.xlu0 %112  ;;  %v1016_v39 = vsel %vm520_vm4, 4294967295, %v1015_v39  ;;  %vm529_vm8 = vmor %vm67_vm6, %vm91_vm2  ;;  %vm95_vm4 = vcmp.eq.s32.totalorder %v83_v24, %v475_v30  ;;  %vm70_vm2 = vcmp.eq.s32.totalorder %v459_v14, %v472_v29  ;;  %v1112_v24 = vmov 0 }
  0xa6   :  { %vm120_vm15 = vcmp.eq.s32.totalorder %v110_v19, %v467_v26  ;;  %v1018_v41 = vsel %vm529_vm8, 4294967295, %v1017_v41  ;;  %vm121_vm11 = vcmp.eq.s32.totalorder %v110_v19, %v472_v29  ;;  %vm537_vm14 = vmor %vm68_vm9, %vm92_vm5  ;;  %vm122_vm0 = vcmp.eq.s32.totalorder %v110_v19, %v475_v30 }
  0xa7   :  { %v1020_v42 = vsel %vm537_vm14, 4294967295, %v1019_v42  ;;  %vm545_vm6 = vmor %vm69_vm12, %vm93_vm7  ;;  %vm123_vm5 = vcmp.eq.s32.totalorder %v113_v27, %v467_v26  ;;  %vm71_vm9 = vcmp.eq.s32.totalorder %v459_v14, %v475_v30  ;;  %vm125_vm12 = vcmp.eq.s32.totalorder %v113_v27, %v475_v30 }
  0xa8   :  { %vm551_vm8 = vmor %vm495_vm13, %vm120_vm15  ;;  %vm124_vm13 = vcmp.eq.s32.totalorder %v113_v27, %v472_v29  ;;  %v1092_v14 = vmov 0  ;;  %v1102_v19 = vmov 0  ;;  %v1118_v27 = vmov 0 }
  0xa9   :  { %v461_v20 = vpop.permute.xlu1 %115  ;;  %vm558_vm14 = vmor %vm70_vm2, %vm94_vm10 }
  0xaa   :  { %v146_v34 = vpop.permute.xlu0 %145  ;;  %v1026_v46 = vsel %vm558_vm14, 4294967295, %v1025_v46  ;;  %vm564_vm7 = vmor %vm504_vm1, %vm121_vm11  ;;  %vm1033_vm1 = vnez %v1004_v32 }
  0xab   :  { %vm571_vm15 = vmor %vm71_vm9, %vm95_vm4  ;;  %vm126_vm4 = vcmp.eq.s32.totalorder %v461_v20, %v467_v26  ;;  %vm156_vm2 = vcmp.eq.s32.totalorder %v146_v34, %v467_v26  ;;  %vm1036_vm9 = vnez %v1008_v35  ;;  %vm158_vm14 = vcmp.eq.s32.totalorder %v146_v34, %v475_v30 }
  0xac   :  { %v1030_v49 = vsel %vm571_vm15, 4294967295, %v1029_v49  ;;  %vm577_vm10 = vmor %vm514_vm3, %vm122_vm0  ;;  %vm127_vm0 = vcmp.eq.s32.totalorder %v461_v20, %v472_v29  ;;  %vm157_vm3 = vcmp.eq.s32.totalorder %v146_v34, %v472_v29  ;;  %v1132_v35 = vmov 0 }
  0xad   :  { %v463_v22 = vpop.permute.xlu1 %118  ;;  %vm584_vm11 = vmor %vm1033_vm1, %vm123_vm5  ;;  %vm1039_vm5 = vnez %v1012_v37  ;;  %v1135_v37 = vmov 0 }
  0xae   :  { %v155_v45 = vpop.permute.xlu0 %154  ;;  %v1035_v51 = vsel %vm584_vm11, 4294967295, %v1034_v51  ;;  %vm593_vm15 = vmor %vm1036_vm9, %vm124_vm13  ;;  %vm128_vm11 = vcmp.eq.s32.totalorder %v461_v20, %v475_v30  ;;  %vm1042_vm13 = vnez %v1016_v39  ;;  %v1104_v20 = vmov 0 }
  0xaf   :  { %v1038_v52 = vsel %vm593_vm15, 4294967295, %v1037_v52  ;;  %vm602_vm1 = vmor %vm1039_vm5, %vm125_vm12  ;;  %vm129_vm12 = vcmp.eq.s32.totalorder %v463_v22, %v467_v26  ;;  %vm1047_vm5 = vnez %v1018_v41  ;;  %v1139_v39 = vmov 0 }
  0xb0   :  { %v1041_v53 = vsel %vm602_vm1, 4294967295, %v1040_v53  ;;  %vm611_vm9 = vmor %vm1042_vm13, %vm126_vm4 }
  0xb1   :  { %v1044_v54 = vsel %vm611_vm9, 4294967295, %v1043_v54  ;;  %vm617_vm15 = vmor %vm551_vm8, %vm156_vm2  ;;  %vm130_vm8 = vcmp.eq.s32.totalorder %v463_v22, %v472_v29  ;;  %vm1052_vm2 = vnez %v1020_v42  ;;  %v1143_v42 = vmov 0 }
  0xb2   :  { %v465_v25 = vpop.permute.xlu1 %148  ;;  %v1046_v55 = vsel %vm617_vm15, 4294967295, %v1045_v55  ;;  %vm627_vm1 = vmor %vm1047_vm5, %vm127_vm0  ;;  %vm165_vm5 = vcmp.eq.s32.totalorder %v155_v45, %v467_v26 }
  0xb3   :  { %v185_v56 = vpop.permute.xlu0 %184  ;;  %v1049_v58 = vsel %vm627_vm1, 4294967295, %v1048_v58  ;;  %vm633_vm4 = vmor %vm564_vm7, %vm157_vm3  ;;  %vm131_vm7 = vcmp.eq.s32.totalorder %v463_v22, %v475_v30 }
  0xb4   :  { %v1051_v59 = vsel %vm633_vm4, 4294967295, %v1050_v59  ;;  %vm641_vm13 = vmor %vm1052_vm2, %vm128_vm11  ;;  %vm159_vm11 = vcmp.eq.s32.totalorder %v465_v25, %v467_v26  ;;  %vm1057_vm2 = vnez %v1026_v46  ;;  %vm166_vm4 = vcmp.eq.s32.totalorder %v155_v45, %v472_v29 }
  0xb5   :  { %v1054_v60 = vsel %vm641_vm13, 4294967295, %v1053_v60  ;;  %vm647_vm0 = vmor %vm577_vm10, %vm158_vm14  ;;  %vm160_vm14 = vcmp.eq.s32.totalorder %v465_v25, %v472_v29  ;;  %vm1058_vm10 = vnez %v1030_v49  ;;  %vm195_vm15 = vcmp.eq.s32.totalorder %v185_v56, %v467_v26 }
  0xb6   :  { %v469_v28 = vpop.permute.xlu1 %151  ;;  %v1056_v61 = vsel %vm647_vm0, 4294967295, %v1055_v61  ;;  %vm141_vm3 = vmor %vm545_vm6, %vm129_vm12  ;;  %vm167_vm6 = vcmp.eq.s32.totalorder %v155_v45, %v475_v30  ;;  %vm161_vm12 = vcmp.eq.s32.totalorder %v465_v25, %v475_v30  ;;  %v1115_v25 = vmov 0 }
  0xb7   :  { %vm142_vm13 = vmor %vm1057_vm2, %vm130_vm8  ;;  %vm1061_vm8 = vnez %v1035_v51 }
  0xb8   :  { %v218_v62 = vpop.permute.xlu0 %217  ;;  %vm143_vm0 = vmor %vm1058_vm10, %vm131_vm7  ;;  %vm162_vm7 = vcmp.eq.s32.totalorder %v469_v28, %v467_v26 }
  0xb9   :  { %vm670_vm1 = vmor %vm141_vm3, %vm165_vm5  ;;  %vm1066_vm3 = vnez %v1038_v52 }
  0xba   :  { %v1060_v0 = vsel %vm670_vm1, 4294967295, %v1059_v0  ;;  %vm676_vm2 = vmor %vm1061_vm8, %vm159_vm11  ;;  %vm196_vm11 = vcmp.eq.s32.totalorder %v185_v56, %v472_v29  ;;  %vm163_vm8 = vcmp.eq.s32.totalorder %v469_v28, %v472_v29 }
  0xbb   :  { %v489_v31 = vpop.permute.xlu1 %181  ;;  %v1063_v1 = vsel %vm676_vm2, 4294967295, %v1062_v1  ;;  %vm685_vm9 = vmor %vm142_vm13, %vm166_vm4  ;;  %vm1071_vm4 = vnez %v1041_v53 }
  0xbc   :  { %vm192_vm10 = vcmp.eq.s32.totalorder %v489_v31, %v467_v26  ;;  %v1065_v2 = vsel %vm685_vm9, 4294967295, %v1064_v2  ;;  %vm691_vm5 = vmor %vm1066_vm3, %vm160_vm14  ;;  %vm193_vm1 = vcmp.eq.s32.totalorder %v489_v31, %v472_v29  ;;  %vm197_vm14 = vcmp.eq.s32.totalorder %v185_v56, %v475_v30  ;;  %v227_v6 = vpop.permute.xlu0 %226 }
  0xbd   :  { %v1068_v4 = vsel %vm691_vm5, 4294967295, %v1067_v4  ;;  %vm700_vm2 = vmor %vm143_vm0, %vm167_vm6  ;;  %vm164_vm3 = vcmp.eq.s32.totalorder %v469_v28, %v475_v30  ;;  %vm194_vm9 = vcmp.eq.s32.totalorder %v489_v31, %v475_v30  ;;  %vm1072_vm5 = vnez %v1063_v1 }
  0xbe   :  { %v1070_v5 = vsel %vm700_vm2, 4294967295, %v1069_v5  ;;  %vm173_vm13 = vmor %vm1071_vm4, %vm161_vm12  ;;  %vm1075_vm6 = vnez %v1044_v54  ;;  %vm1078_vm12 = vnez %v1046_v55  ;;  %v1120_v28 = vmov 0 }
  0xbf   :  { %v526_v40 = vpop.permute.xlu1 %187  ;;  %vm713_vm0 = vmor %vm1072_vm5, %vm195_vm15  ;;  %vm228_vm5 = vcmp.eq.s32.totalorder %v218_v62, %v467_v26  ;;  %vm1079_vm15 = vnez %v1068_v4  ;;  %v1123_v31 = vmov 0 }
  0xc0   :  { %v1074_v7 = vsel %vm713_vm0, 4294967295, %v1073_v7  ;;  %vm719_vm2 = vmor %vm1075_vm6, %vm162_vm7  ;;  %vm1082_vm6 = vnez %v1049_v58 }
  0xc1   :  { %v1077_v8 = vsel %vm719_vm2, 4294967295, %v1076_v8  ;;  %vm204_vm4 = vmor %vm1078_vm12, %vm192_vm10  ;;  %vm1085_vm2 = vnez %v1051_v59  ;;  %vm229_vm12 = vcmp.eq.s32.totalorder %v218_v62, %v472_v29  ;;  %v257_v17 = vpop.permute.xlu0 %256 }
  0xc2   :  { %vm728_vm0 = vmor %vm1079_vm15, %vm196_vm11  ;;  %vm1088_vm15 = vnez %v1054_v60 }
  0xc3   :  { %v569_v48 = vpop.permute.xlu1 %190  ;;  %v1081_v10 = vsel %vm728_vm0, 4294967295, %v1080_v10  ;;  %vm734_vm7 = vmor %vm1082_vm6, %vm163_vm8  ;;  %vm1091_vm8 = vnez %v1056_v61 }
  0xc4   :  { %v1084_v11 = vsel %vm734_vm7, 4294967295, %v1083_v11  ;;  %vm205_vm10 = vmor %vm1085_vm2, %vm193_vm1  ;;  %vm230_vm7 = vcmp.eq.s32.totalorder %v218_v62, %v475_v30  ;;  %vm201_vm2 = vcmp.eq.s32.totalorder %v569_v48, %v467_v26 }
  0xc5   :  { %vm741_vm11 = vmor %vm173_vm13, %vm197_vm14  ;;  %vm202_vm14 = vcmp.eq.s32.totalorder %v569_v48, %v472_v29 }
  0xc6   :  { %v1087_v12 = vsel %vm741_vm11, 4294967295, %v1086_v12  ;;  %vm747_vm0 = vmor %vm1088_vm15, %vm164_vm3  ;;  %vm239_vm11 = vcmp.eq.s32.totalorder %v227_v6, %v475_v30  ;;  %v290_v22 = vpop.permute.xlu0 %289 }
  0xc7   :  { %v1090_v13 = vsel %vm747_vm0, 4294967295, %v1089_v13  ;;  %vm206_vm6 = vmor %vm1091_vm8, %vm194_vm9  ;;  %vm203_vm9 = vcmp.eq.s32.totalorder %v569_v48, %v475_v30  ;;  %vm1099_vm8 = vnez %v1065_v2 }
  0xc8   :  { %v623_v57 = vpop.permute.xlu1 %220  ;;  %vm754_vm1 = vmor %vm204_vm4, %vm228_vm5  ;;  %vm198_vm4 = vcmp.eq.s32.totalorder %v526_v40, %v467_v26  ;;  %vm1098_vm5 = vnez %v1060_v0 }
  0xc9   :  { %v1093_v14 = vsel %vm754_vm1, 4294967295, %v1092_v14  ;;  %vm760_vm13 = vmor %vm205_vm10, %vm229_vm12  ;;  %vm237_vm12 = vcmp.eq.s32.totalorder %v227_v6, %v467_v26  ;;  %vm231_vm15 = vcmp.eq.s32.totalorder %v623_v57, %v467_v26  ;;  %vm233_vm0 = vcmp.eq.s32.totalorder %v623_v57, %v475_v30 }
  0xca   :  { %v1095_v15 = vsel %vm760_vm13, 4294967295, %v1094_v15  ;;  %vm766_vm3 = vmor %vm206_vm6, %vm230_vm7  ;;  %vm199_vm7 = vcmp.eq.s32.totalorder %v526_v40, %v472_v29  ;;  %vm232_vm13 = vcmp.eq.s32.totalorder %v623_v57, %v472_v29  ;;  %v299_v34 = vpop.permute.xlu0 %298 }
  0xcb   :  { %v1097_v16 = vsel %vm766_vm3, 4294967295, %v1096_v16  ;;  %vm213_vm10 = vmor %vm1098_vm5, %vm201_vm2  ;;  %vm238_vm3 = vcmp.eq.s32.totalorder %v227_v6, %v472_v29  ;;  %vm200_vm2 = vcmp.eq.s32.totalorder %v526_v40, %v475_v30  ;;  %vm1100_vm5 = vnez %v1070_v5 }
  0xcc   :  { %v663_v63 = vpop.permute.xlu1 %223  ;;  %vm214_vm6 = vmor %vm1099_vm8, %vm202_vm14  ;;  %vm1101_vm8 = vnez %v1077_v8 }
  0xcd   :  { %vm215_vm1 = vmor %vm1100_vm5, %vm203_vm9  ;;  %vm1106_vm9 = vnez %v1074_v7 }
  0xce   :  { %vm797_vm14 = vmor %vm1101_vm8, %vm198_vm4 }
  0xcf   :  { %v1103_v19 = vsel %vm797_vm14, 4294967295, %v1102_v19  ;;  %vm801_vm5 = vmor %vm213_vm10, %vm237_vm12  ;;  %vm1109_vm14 = vnez %v1084_v11 }
  0xd0   :  { %v1105_v20 = vsel %vm801_vm5, 4294967295, %v1104_v20  ;;  %vm807_vm4 = vmor %vm1106_vm9, %vm231_vm15  ;;  %vm1114_vm5 = vnez %v1081_v10 }
  0xd1   :  { %v254_v9 = vpop.permute.xlu1 %253  ;;  %v1108_v21 = vsel %vm807_vm4, 4294967295, %v1107_v21  ;;  %vm814_vm10 = vmor %vm1109_vm14, %vm199_vm7  ;;  %vm1117_vm4 = vnez %v1090_v13 }
  0xd2   :  { %vm264_vm8 = vcmp.eq.s32.totalorder %v254_v9, %v467_v26  ;;  %v1111_v23 = vsel %vm814_vm10, 4294967295, %v1110_v23  ;;  %vm818_vm12 = vmor %vm214_vm6, %vm238_vm3  ;;  %vm265_vm15 = vcmp.eq.s32.totalorder %v254_v9, %v472_v29  ;;  %vm1122_vm3 = vnez %v1087_v12 }
  0xd3   :  { %v1113_v24 = vsel %vm818_vm12, 4294967295, %v1112_v24  ;;  %vm824_vm9 = vmor %vm1114_vm5, %vm232_vm13  ;;  %vm266_vm13 = vcmp.eq.s32.totalorder %v254_v9, %v475_v30  ;;  %vm267_vm5 = vcmp.eq.s32.totalorder %v257_v17, %v467_v26  ;;  %vm1125_vm12 = vnez %v1093_v14 }
  0xd4   :  { %v1116_v25 = vsel %vm824_vm9, 4294967295, %v1115_v25  ;;  %vm831_vm7 = vmor %vm1117_vm4, %vm200_vm2  ;;  %vm300_vm4 = vcmp.eq.s32.totalorder %v290_v22, %v467_v26  ;;  %vm1128_vm9 = vnez %v1108_v21 }
  0xd5   :  { %v779_v18 = vpop.permute.xlu1 %259  ;;  %v1119_v27 = vsel %vm831_vm7, 4294967295, %v1118_v27  ;;  %vm835_vm14 = vmor %vm215_vm1, %vm239_vm11  ;;  %vm268_vm11 = vcmp.eq.s32.totalorder %v257_v17, %v472_v29  ;;  %vm1126_vm1 = vnez %v1095_v15  ;;  %vm1127_vm7 = vnez %v1097_v16 }
  0xd6   :  { %v1121_v28 = vsel %vm835_vm14, 4294967295, %v1120_v28  ;;  %vm841_vm6 = vmor %vm1122_vm3, %vm233_vm0  ;;  %vm301_vm0 = vcmp.eq.s32.totalorder %v290_v22, %v472_v29  ;;  %vm269_vm3 = vcmp.eq.s32.totalorder %v257_v17, %v475_v30 }
  0xd7   :  { %v1124_v31 = vsel %vm841_vm6, 4294967295, %v1123_v31  ;;  %vm276_vm2 = vmor %vm1125_vm12, %vm264_vm8  ;;  %vm302_vm6 = vcmp.eq.s32.totalorder %v290_v22, %v475_v30 }
  0xd8   :  { %vm277_vm14 = vmor %vm1126_vm1, %vm265_vm15  ;;  %vm1134_vm12 = vnez %v1124_v31 }
  0xd9   :  { %v263_v32 = vpop.permute.xlu1 %262  ;;  %vm278_vm10 = vmor %vm1127_vm7, %vm266_vm13  ;;  %vm1131_vm7 = vnez %v1116_v25 }
  0xda   :  { %vm860_vm8 = vmor %vm1128_vm9, %vm267_vm5  ;;  %vm273_vm15 = vcmp.eq.s32.totalorder %v263_v32, %v467_v26  ;;  %vm235_vm5 = vcmp.eq.s32.totalorder %v663_v63, %v472_v29 }
  0xdb   :  { %v1130_v33 = vsel %vm860_vm8, 4294967295, %v1129_v33  ;;  %vm312_vm1 = vmor %vm276_vm2, %vm300_vm4  ;;  %vm274_vm8 = vcmp.eq.s32.totalorder %v263_v32, %v472_v29  ;;  %vm236_vm4 = vcmp.eq.s32.totalorder %v663_v63, %v475_v30 }
  0xdc   :  { %vm869_vm13 = vmor %vm1131_vm7, %vm268_vm11  ;;  %v324_v36 = vsel %vm312_vm1, 1, %v380_v3  ;;  %vm309_vm1 = vcmp.eq.s32.totalorder %v299_v34, %v467_v26  ;;  %vm1142_vm7 = vnez %v1111_v23 }
  0xdd   :  { %v1133_v35 = vsel %vm869_vm13, 4294967295, %v1132_v35  ;;  %vm313_vm9 = vmor %vm277_vm14, %vm301_vm0  ;;  %336 = vst [vmem:[%s1002_s2] sm:$0xff] %v324_v36  ;;  %vm275_vm14 = vcmp.eq.s32.totalorder %v263_v32, %v475_v30  ;;  %vm1137_vm0 = vcmp.eq.s32.totalorder %v663_v63, %v467_v26 }
  0xde   :  { %vm879_vm2 = vmor %vm1134_vm12, %vm269_vm3  ;;  %v325_v38 = vsel %vm313_vm9, 1, %v380_v3  ;;  %vm1138_vm3 = vnez %v1103_v19  ;;  %v293_v41 = vpop.permute.xlu1 %292 }
  0xdf   :  { %v1136_v37 = vsel %vm879_vm2, 4294967295, %v1135_v37  ;;  %vm314_vm11 = vmor %vm278_vm10, %vm302_vm6  ;;  %337 = vst [vmem:[%s1002_s2 + $0x8] sm:$0xff] %v325_v38  ;;  %vm1141_vm10 = vnez %v1105_v20  ;;  %vm303_vm2 = vcmp.eq.s32.totalorder %v293_v41, %v467_v26 }
  0xe0   :  { %vm895_vm12 = vmor %vm1138_vm3, %vm1137_vm0  ;;  %v326_v40 = vsel %vm314_vm11, 1, %v380_v3  ;;  %vm310_vm0 = vcmp.eq.s32.totalorder %v299_v34, %v472_v29  ;;  %vm1146_vm3 = vnez %v1119_v27 }
  0xe1   :  { %v1140_v39 = vsel %vm895_vm12, 4294967295, %v1139_v39  ;;  %vm285_vm6 = vmor %vm1141_vm10, %vm273_vm15  ;;  %338 = vst [vmem:[%s1002_s2 + $0x10] sm:$0xff] %v326_v40  ;;  %vm1145_vm15 = vnez %v1113_v24  ;;  %vm1149_vm10 = vnez %v1121_v28 }
  0xe2   :  { %vm913_vm9 = vmor %vm1142_vm7, %vm235_vm5  ;;  %v296_v47 = vpop.permute.xlu1 %295 }
  0xe3   :  { %v1144_v42 = vsel %vm913_vm9, 4294967295, %v1143_v42  ;;  %vm286_vm11 = vmor %vm1145_vm15, %vm274_vm8  ;;  %vm311_vm9 = vcmp.eq.s32.totalorder %v299_v34, %v475_v30  ;;  %vm304_vm15 = vcmp.eq.s32.totalorder %v293_v41, %v472_v29 }
  0xe4   :  { %vm930_vm5 = vmor %vm1146_vm3, %vm236_vm4  ;;  %vm305_vm4 = vcmp.eq.s32.totalorder %v293_v41, %v475_v30 }
  0xe5   :  { %vm287_vm7 = vmor %vm1149_vm10, %vm275_vm14  ;;  %vm270_vm14 = vcmp.eq.s32.totalorder %v779_v18, %v467_v26 }
  0xe6   :  { %vm321_vm12 = vmor %vm285_vm6, %vm309_vm1  ;;  %vm271_vm1 = vcmp.eq.s32.totalorder %v779_v18, %v472_v29 }
  0xe7   :  { %vm322_vm8 = vmor %vm286_vm11, %vm310_vm0  ;;  %v333_v44 = vsel %vm321_vm12, 1, %v380_v3  ;;  %vm1150_vm12 = vnez %v1130_v33  ;;  %vm1152_vm0 = vnez %v1136_v37 }
  0xe8   :  { %vm323_vm13 = vmor %vm287_vm7, %vm311_vm9  ;;  %v334_v45 = vsel %vm322_vm8, 1, %v380_v3  ;;  %345 = vst [vmem:[%s1002_s2 + $0x48] sm:$0xff] %v333_v44  ;;  %vm1151_vm9 = vnez %v1133_v35  ;;  %vm306_vm7 = vcmp.eq.s32.totalorder %v296_v47, %v467_v26  ;;  %vm1154_vm8 = vnez %v1144_v42 }
  0xe9   :  { %v335_v46 = vsel %vm323_vm13, 1, %v380_v3  ;;  %346 = vst [vmem:[%s1002_s2 + $0x50] sm:$0xff] %v334_v45  ;;  %vm315_vm6 = vmor %vm1150_vm12, %vm303_vm2  ;;  %vm272_vm13 = vcmp.eq.s32.totalorder %v779_v18, %v475_v30  ;;  %vm1153_vm2 = vnez %v1140_v39 }
  0xea   :  { %347 = vst [vmem:[%s1002_s2 + $0x58] sm:$0xff] %v335_v46  ;;  %vm316_vm11 = vmor %vm1151_vm9, %vm304_vm15  ;;  %v327_v48 = vsel %vm315_vm6, 1, %v380_v3  ;;  %vm308_vm6 = vcmp.eq.s32.totalorder %v296_v47, %v475_v30 }
  0xeb   :  { %vm317_vm3 = vmor %vm1152_vm0, %vm305_vm4  ;;  %v328_v49 = vsel %vm316_vm11, 1, %v380_v3  ;;  %339 = vst [vmem:[%s1002_s2 + $0x18] sm:$0xff] %v327_v48  ;;  %vm307_vm4 = vcmp.eq.s32.totalorder %v296_v47, %v472_v29 }
  0xec   :  { %v329_v50 = vsel %vm317_vm3, 1, %v380_v3  ;;  %340 = vst [vmem:[%s1002_s2 + $0x20] sm:$0xff] %v328_v49  ;;  %vm282_vm10 = vmor %vm1153_vm2, %vm270_vm14 }
  0xed   :  { %341 = vst [vmem:[%s1002_s2 + $0x28] sm:$0xff] %v329_v50  ;;  %vm283_vm15 = vmor %vm1154_vm8, %vm271_vm1 }
  0xee   :  { %vm284_vm12 = vmor %vm930_vm5, %vm272_vm13 }
  0xef   :  { %vm318_vm9 = vmor %vm282_vm10, %vm306_vm7 }
  0xf0   :  { %vm319_vm11 = vmor %vm283_vm15, %vm307_vm4  ;;  %v330_v51 = vsel %vm318_vm9, 1, %v380_v3 }
  0xf1   :  { %vm320_vm14 = vmor %vm284_vm12, %vm308_vm6  ;;  %v331_v26 = vsel %vm319_vm11, 1, %v380_v3  ;;  %342 = vst [vmem:[%s1002_s2 + $0x30] sm:$0xff] %v330_v51 }
  0xf2   :  { %v332_v52 = vsel %vm320_vm14, 1, %v380_v3  ;;  %343 = vst [vmem:[%s1002_s2 + $0x38] sm:$0xff] %v331_v26 }
  0xf3   :  { %344 = vst [vmem:[%s1002_s2 + $0x40] sm:$0xff] %v332_v52 }
  0xf4 PF:  {}

</bundles_post_ra>
